<compile_context>
chip_gen: v6e
topology: v6e:2x2x1
jax: 0.10.0
libtpu: 0.0.40
codegen_flags: <defaults>
</compile_context>

<pallas_src>
import jax
import jax.numpy as jnp
from jax.experimental import pallas as pl
from jax.experimental.pallas import tpu as pltpu

IN_FEATURES = 64
OUT_FEATURES = 64
PACKED = 2 * OUT_FEATURES  # 128 lanes = two logical rows per vreg row


def _linear_softmax2_kernel(x_ref, w2_ref, b2_ref, ones_ref, o_ref):
    # Packed linear: x_ref is [tm2, 128] (two original rows per lane-row),
    # w2_ref = blockdiag(W^T, W^T), b2_ref = [b, b]. One lane-dense MXU matmul
    # computes both rows' Linear(64,64) outputs.
    y = jnp.dot(x_ref[...], w2_ref[...],
                preferred_element_type=jnp.float32) + b2_ref[...]

    # Exact per-original-row max (each original row is one 64-lane segment):
    # two masked full-row XLU reductions, then per-lane select of the right one.
    lane = jax.lax.broadcasted_iota(jnp.int32, y.shape, 1)
    hi = lane >= OUT_FEATURES
    neg_inf = jnp.float32(-jnp.inf)
    m_lo = jnp.max(jnp.where(hi, neg_inf, y), axis=-1, keepdims=True)
    m_hi = jnp.max(jnp.where(hi, y, neg_inf), axis=-1, keepdims=True)
    row_max = jnp.where(hi, m_hi, m_lo)

    numerator = jnp.exp2(y - row_max)

    # Segment sum on the (otherwise idle) MXU: ones_ref = blockdiag(1_{64x64}).
    # Result lands already broadcast across each 64-lane segment -> no XLU sum,
    # no lane broadcast before the final multiply.
    denominator = jnp.dot(numerator, ones_ref[...],
                          preferred_element_type=jnp.float32)

    o_ref[...] = numerator * pl.reciprocal(denominator, approx=False)


def nn_forward(x, weight, bias, *, tm=4096):
    """x: [M, 64] f32; weight: [out=64, in=64] f32; bias: [64] f32."""
    M_in, K = x.shape
    assert K == IN_FEATURES

    M = M_in
    if M % 2:
        # Odd row counts need one extra row for the 2-rows-per-128-lanes packing.
        # Even M (the common case) takes the zero-copy path below.
        x = jnp.pad(x, ((0, 1), (0, 0)))
        M += 1
    M2 = M // 2

    # Lane packing: [M, 64] -> [M/2, 128] is a row-major reshape (no HBM copy).
    xp = x.reshape(M2, PACKED)

    wt = weight.T.astype(jnp.float32)                    # [in, out]
    eye2 = jnp.eye(2, dtype=jnp.float32)
    w2 = jnp.kron(eye2, wt)                              # [128, 128] blockdiag(W^T, W^T)
    ones_seg = jnp.kron(eye2, jnp.ones((OUT_FEATURES, OUT_FEATURES),
                                       jnp.float32))     # [128, 128] segment-sum matrix
    b2 = jnp.concatenate([bias, bias]).reshape(1, PACKED).astype(jnp.float32)

    # Packed row tile. Block second-to-last dim must be a multiple of 8 or equal
    # to the full (packed) dim.
    tm2 = max(tm // 2, 8)
    if M2 <= tm2:
        tm2 = M2                       # single block covering the whole array
        grid = (1,)
    else:
        tm2 = (tm2 // 8) * 8
        grid = (pl.cdiv(M2, tm2),)     # Pallas masks the partial last block

    cost = pl.CostEstimate(
        flops=2 * M2 * PACKED * PACKED * 2,              # linear + segment-sum matmuls
        transcendentals=M2 * PACKED,                     # exp2
        bytes_accessed=4 * (2 * M2 * PACKED + 2 * PACKED * PACKED + PACKED),
    )

    out_packed = pl.pallas_call(
        _linear_softmax2_kernel,
        out_shape=jax.ShapeDtypeStruct((M2, PACKED), jnp.float32),
        grid_spec=pltpu.PrefetchScalarGridSpec(
            num_scalar_prefetch=0,
            grid=grid,
            in_specs=[
                # x: streamed lane-dense row tiles (double-buffered by Pallas).
                pl.BlockSpec((tm2, PACKED), lambda i: (i, 0)),
                # Weights / bias / ones: constant index_map -> VMEM-resident.
                pl.BlockSpec((PACKED, PACKED), lambda i: (0, 0)),
                pl.BlockSpec((1, PACKED), lambda i: (0, 0)),
                pl.BlockSpec((PACKED, PACKED), lambda i: (0, 0)),
            ],
            out_specs=pl.BlockSpec((tm2, PACKED), lambda i: (i, 0)),
        ),
        compiler_params=pltpu.CompilerParams(
            dimension_semantics=("parallel",)),
        cost_estimate=cost,
    )(xp, w2, b2, ones_seg)

    out = out_packed.reshape(M, OUT_FEATURES)            # free row-major reshape
    return out[:M_in] if M != M_in else out


if __name__ == "__main__":
    key = jax.random.PRNGKey(0)
    kx, kw, kb = jax.random.split(key, 3)

    # Deterministic parameter init (PyTorch Linear-style uniform bound).
    bound = 1.0 / (IN_FEATURES ** 0.5)
    weight = jax.random.uniform(kw, (OUT_FEATURES, IN_FEATURES),
                                dtype=jnp.float32, minval=-bound, maxval=bound)
    bias = jax.random.uniform(kb, (OUT_FEATURES,),
                              dtype=jnp.float32, minval=-bound, maxval=bound)

    # Small example input: M=8 rows of 64 features.
    x = jax.random.normal(kx, (8, IN_FEATURES), dtype=jnp.float32)

    out = nn_forward(x, weight, bias)
    out = jax.block_until_ready(out)

    # Reference check in plain JAX (base-2 softmax).
    y_ref = x @ weight.T + bias
    num = jnp.exp2(y_ref - jnp.max(y_ref, axis=-1, keepdims=True))
    ref = num / jnp.sum(num, axis=-1, keepdims=True)
    assert out.shape == ref.shape
    assert jnp.allclose(out, ref, atol=1e-5, rtol=1e-5)

    print("KERNEL_OK")
</pallas_src>

<mosaic_0001>
module attributes {stable_mosaic.version = 11 : i64} {
  func.func @_linear_softmax2_kernel(%arg0: i32, %arg1: memref<4x128xf32, #tpu.memory_space<vmem>>, %arg2: memref<128x128xf32, #tpu.memory_space<vmem>>, %arg3: memref<1x128xf32, #tpu.memory_space<vmem>>, %arg4: memref<128x128xf32, #tpu.memory_space<vmem>>, %arg5: memref<4x128xf32, #tpu.memory_space<vmem>>) attributes {dimension_semantics = [#tpu.dimension_semantics<parallel>], iteration_bounds = array<i64: 1>, scalar_prefetch = 0 : i64, scratch_operands = 0 : i64, tpu.core_type = #tpu.core_type<tc>, window_params = [{transform_indices = @transform_0, window_bounds = array<i64: 4, 128>}, {pipeline_mode = #tpu.pipeline_mode<synchronous>, transform_indices = @transform_1, window_bounds = array<i64: 128, 128>}, {pipeline_mode = #tpu.pipeline_mode<synchronous>, transform_indices = @transform_2, window_bounds = array<i64: 1, 128>}, {pipeline_mode = #tpu.pipeline_mode<synchronous>, transform_indices = @transform_3, window_bounds = array<i64: 128, 128>}, {transform_indices = @transform_4, window_bounds = array<i64: 4, 128>}]} {
    %c0 = arith.constant 0 : index
    %c0_0 = arith.constant 0 : index
    %0 = vector.load %arg1[%c0, %c0_0] : memref<4x128xf32, #tpu.memory_space<vmem>>, vector<4x128xf32>
    %c0_1 = arith.constant 0 : index
    %c0_2 = arith.constant 0 : index
    %1 = vector.load %arg2[%c0_1, %c0_2] : memref<128x128xf32, #tpu.memory_space<vmem>>, vector<128x128xf32>
    %cst = arith.constant dense<0.000000e+00> : vector<4x128xf32>
    %2 = tpu.matmul %0, %1, %cst {dimension_numbers = #tpu.dot_dimension_numbers<[1], [0], [0], [1], [0, 0, 1, 1], [], []>} : vector<4x128xf32>, vector<128x128xf32>, vector<4x128xf32> -> vector<4x128xf32>
    %c0_3 = arith.constant 0 : index
    %c0_4 = arith.constant 0 : index
    %3 = vector.load %arg3[%c0_3, %c0_4] : memref<1x128xf32, #tpu.memory_space<vmem>>, vector<1x128xf32>
    %4 = vector.broadcast %3 : vector<1x128xf32> to vector<4x128xf32>
    %5 = arith.addf %2, %4 : vector<4x128xf32>
    %6 = tpu.iota {dimensions = array<i32: 1>} : vector<4x128xi32>
    %c64_i32 = arith.constant 64 : i32
    %7 = vector.broadcast %c64_i32 : i32 to vector<4x128xi32>
    %8 = arith.cmpi sge, %6, %7 : vector<4x128xi32>
    %cst_5 = arith.constant 0xFF800000 : f32
    %9 = vector.broadcast %cst_5 : f32 to vector<4x128xf32>
    %10 = arith.select %8, %9, %5 : vector<4x128xi1>, vector<4x128xf32>
    %cst_6 = arith.constant dense<0xFF800000> : vector<4xf32>
    %11 = vector.multi_reduction <maximumf>, %10, %cst_6 [1] : vector<4x128xf32> to vector<4xf32>
    %12 = vector.shape_cast %11 : vector<4xf32> to vector<4x1xf32>
    %cst_7 = arith.constant 0xFF800000 : f32
    %13 = vector.broadcast %cst_7 : f32 to vector<4x128xf32>
    %14 = arith.select %8, %5, %13 : vector<4x128xi1>, vector<4x128xf32>
    %cst_8 = arith.constant dense<0xFF800000> : vector<4xf32>
    %15 = vector.multi_reduction <maximumf>, %14, %cst_8 [1] : vector<4x128xf32> to vector<4xf32>
    %16 = vector.shape_cast %15 : vector<4xf32> to vector<4x1xf32>
    %17 = vector.shape_cast %16 : vector<4x1xf32> to vector<4x1xf32>
    %18 = vector.broadcast %17 : vector<4x1xf32> to vector<4x128xf32>
    %19 = vector.shape_cast %12 : vector<4x1xf32> to vector<4x1xf32>
    %20 = vector.broadcast %19 : vector<4x1xf32> to vector<4x128xf32>
    %21 = arith.select %8, %18, %20 : vector<4x128xi1>, vector<4x128xf32>
    %22 = arith.subf %5, %21 : vector<4x128xf32>
    %23 = math.exp2 %22 : vector<4x128xf32>
    %c0_9 = arith.constant 0 : index
    %c0_10 = arith.constant 0 : index
    %24 = vector.load %arg4[%c0_9, %c0_10] : memref<128x128xf32, #tpu.memory_space<vmem>>, vector<128x128xf32>
    %cst_11 = arith.constant dense<0.000000e+00> : vector<4x128xf32>
    %25 = tpu.matmul %23, %24, %cst_11 {dimension_numbers = #tpu.dot_dimension_numbers<[1], [0], [0], [1], [0, 0, 1, 1], [], []>} : vector<4x128xf32>, vector<128x128xf32>, vector<4x128xf32> -> vector<4x128xf32>
    %26 = tpu.reciprocal %25 : vector<4x128xf32> -> vector<4x128xf32>
    %27 = arith.mulf %23, %26 : vector<4x128xf32>
    %c0_12 = arith.constant 0 : index
    %c0_13 = arith.constant 0 : index
    %28 = vector.load %arg5[%c0_12, %c0_13] : memref<4x128xf32, #tpu.memory_space<vmem>>, vector<4x128xf32>
    tpu.vector_store %arg5[%c0_12, %c0_13], %27 {strides = array<i32>} : memref<4x128xf32, #tpu.memory_space<vmem>>, vector<4x128xf32>,
    return
  }
  func.func @transform_0(%arg0: i32) -> (i32, i32) {
    %c0_i32 = arith.constant 0 : i32
    %c0_i32_0 = arith.constant 0 : i32
    return %arg0, %c0_i32 : i32, i32
  }
  func.func @transform_1(%arg0: i32) -> (i32, i32) {
    %c0_i32 = arith.constant 0 : i32
    %c0_i32_0 = arith.constant 0 : i32
    %c0_i32_1 = arith.constant 0 : i32
    return %c0_i32, %c0_i32_0 : i32, i32
  }
  func.func @transform_2(%arg0: i32) -> (i32, i32) {
    %c0_i32 = arith.constant 0 : i32
    %c0_i32_0 = arith.constant 0 : i32
    %c0_i32_1 = arith.constant 0 : i32
    return %c0_i32, %c0_i32_0 : i32, i32
  }
  func.func @transform_3(%arg0: i32) -> (i32, i32) {
    %c0_i32 = arith.constant 0 : i32
    %c0_i32_0 = arith.constant 0 : i32
    %c0_i32_1 = arith.constant 0 : i32
    return %c0_i32, %c0_i32_0 : i32, i32
  }
  func.func @transform_4(%arg0: i32) -> (i32, i32) {
    %c0_i32 = arith.constant 0 : i32
    %c0_i32_0 = arith.constant 0 : i32
    return %arg0, %c0_i32 : i32, i32
  }
}

</mosaic_0001>

<bundles_post_ra>
// kernel: tpu_custom_call.1
= control target key start
LH: loop header
LB: loop body
LE: loop exit
PB: predicated region body
PF: predicated region fallthrough
CT: control target
= control target key end

     0   :  { %9 = vsyncpa [#allocation3], 0  ;;  %s559_s0 = inlined_call_operand.hbm [shape: f32[4,128], index: 0, kind: input, shape index: {}]   ;;  %s560_s1 = inlined_call_operand.hbm [shape: f32[128,128], index: 1, kind: input, shape index: {}]   ;;  %s561_s2 = inlined_call_operand.vmem [shape: f32[1,128], index: 2, kind: input, shape index: {}]   ;;  %s562_s3 = inlined_call_operand.hbm [shape: f32[128,128], index: 3, kind: input, shape index: {}]   ;;  %s563_s4 = inlined_call_operand.hbm [shape: f32[4,128], index: 4, kind: output, shape index: {}]  }
   0x1   :  { %10 = vsyncpa [#allocation6], 0 }
   0x2   :  { %11 = vsyncpa [#allocation4], 0  ;;  %s474_s15 = smov [#allocation5]  }
   0x3   :  { %s27_s16 = sshll.u32 %s474_s15, 4  ;;  %s28_s16 = int_to_ptr.vmem [resolvable:$true] %s27_s16 }
   0x4   :  { %s396_s17 = scalar_lea.vmem %s28_s16, 2048  ;;  %p401_p1 = scmp.lt.s32.totalorder %s28_s16, %s28_s16 }
   0x5   :  { %p397_p0 = scmp.ne.s32.totalorder %s28_s16, %s396_s17  ;;  %p402_p2 = scmp.lt.s32.totalorder %s396_s17, %s396_s17 }
   0x7   :  { %p403_p3 = por %p402_p2, %p401_p1 }
   0x9   :  { %p404_p4 = pnand %p403_p3, %p397_p0 }
   0xb   :  { %407 = shalt.err (!%p404_p4)
}
   0xc   :  { %s475_s18 = smov 128   ;;  %s476_s19 = smov 8  }
   0xd   :  { %33 = dma.hbm_to_vmem [thread:$0]  %s560_s1, 2048, %s28_s16, [#allocation6], %s475_s18, %s475_s18, %s476_s19  }
   0xe   :  { %s477_s22 = smov [#allocation2]   ;;  %s478_s24 = smov [#allocation7]  }
   0xf   :  { %s18_s23 = sshll.u32 %s477_s22, 4  ;;  %s41_s25 = sshll.u32 %s478_s24, 4  ;;  %s19_s23 = int_to_ptr.vmem [resolvable:$true] %s18_s23  ;;  %s42_s25 = int_to_ptr.vmem [resolvable:$true] %s41_s25 }
  0x10   :  { %s416_s26 = scalar_lea.vmem %s19_s23, 64  ;;  %p421_p6 = scmp.lt.s32.totalorder %s19_s23, %s19_s23 }
  0x11   :  { %p417_p5 = scmp.ne.s32.totalorder %s19_s23, %s416_s26  ;;  %p422_p7 = scmp.lt.s32.totalorder %s416_s26, %s416_s26 }
  0x13   :  { %p423_p8 = por %p422_p7, %p421_p6 }
  0x15   :  { %p424_p9 = pnand %p423_p8, %p417_p5 }
  0x17   :  { %427 = shalt.err (!%p424_p9)
}
  0x18   :  { %21 = dma.hbm_to_vmem [thread:$0]  %s559_s0, 64, %s19_s23, [#allocation3]  }
  0x19   :  { %s436_s29 = scalar_lea.vmem %s42_s25, 2048  ;;  %p441_p11 = scmp.lt.s32.totalorder %s42_s25, %s42_s25 }
  0x1a   :  { %p437_p10 = scmp.ne.s32.totalorder %s42_s25, %s436_s29  ;;  %p442_p12 = scmp.lt.s32.totalorder %s436_s29, %s436_s29 }
  0x1c   :  { %p443_p13 = por %p442_p12, %p441_p11 }
  0x1e   :  { %p444_p0 = pnand %p443_p13, %p437_p10 }
  0x20   :  { %447 = shalt.err (!%p444_p0)
}
  0x21   :  { %47 = dma.hbm_to_vmem [thread:$0]  %s562_s3, 2048, %s42_s25, [#allocation6], %s475_s18, %s475_s18, %s476_s19  }
  0x22   :  { %468 = dma.done.wait [#allocation3], 64  }
  0x23   :  { %469 = vsyncadd [#allocation3], 4294967232 }
  0x24   :  { %470 = dma.done.wait [#allocation6], 4096  }
  0x25   :  { %471 = vsyncadd [#allocation6], 4294963200  ;;  %v479_v0 = vmov 0.0   ;;  %vm480_vm0 = vmmov 0   ;;  %v73_v1 = vld [vmem:[#allocation5 + $0x78] sm:$0xff]  ;;  %v72_v2 = vld [vmem:[#allocation5 + $0x70] sm:$0xff]  ;;  %v151_v23 = vlaneseq }
  0x26   :  { %306 = vmatprep.subr.mxu0 %v479_v0  ;;  %338 = vmatprep.mubr.msk.f32.mxu0 %vm480_vm0, %v479_v0  ;;  %v71_v3 = vld [vmem:[#allocation5 + $0x68] sm:$0xff]  ;;  %v70_v4 = vld [vmem:[#allocation5 + $0x60] sm:$0xff]  ;;  %v69_v5 = vld [vmem:[#allocation5 + $0x58] sm:$0xff]  ;;  %vm155_vm2 = vcmask 1043456  }
  0x27   :  { %341 = vmatprep.subr.mxu1 %v479_v0  ;;  %373 = vmatprep.mubr.msk.f32.mxu1 %vm480_vm0, %v479_v0  ;;  %v68_v6 = vld [vmem:[#allocation5 + $0x50] sm:$0xff]  ;;  %v67_v7 = vld [vmem:[#allocation5 + $0x48] sm:$0xff]  ;;  %v66_v8 = vld [vmem:[#allocation5 + $0x40] sm:$0xff]  ;;  %v152_v24 = vand.u32 127, %v151_v23 }
  0x28   :  { %307 = vmatpush3.msra.mxu0 %v73_v1  ;;  %v65_v9 = vld [vmem:[#allocation5 + $0x38] sm:$0xff]  ;;  %v64_v10 = vld [vmem:[#allocation5 + $0x30] sm:$0xff]  ;;  %v63_v11 = vld [vmem:[#allocation5 + $0x28] sm:$0xff] }
  0x29   :  { %308 = vmatprep.subr.mxu0 %v479_v0  ;;  %v62_v12 = vld [vmem:[#allocation5 + $0x20] sm:$0xff]  ;;  %v61_v13 = vld [vmem:[#allocation5 + $0x18] sm:$0xff]  ;;  %v60_v14 = vld [vmem:[#allocation5 + $0x10] sm:$0xff]  ;;  %vm153_vm1 = vcmp.ge.s32.totalorder %v152_v24, 64 }
  0x2a   :  { %309 = vmatpush3.msra.mxu0 %v72_v2  ;;  %v59_v15 = vld [vmem:[#allocation5 + $0x8] sm:$0xff]  ;;  %v58_v16 = vld [vmem:[#allocation5] sm:$0xff]  ;;  %v57_v17 = vld [vmem:[#allocation2] sm:$0xf] }
  0x2b   :  { %310 = vmatprep.subr.mxu0 %v479_v0  ;;  %v181_v18 = vld [vmem:[#allocation7 + $0x78] sm:$0xff]  ;;  %v180_v19 = vld [vmem:[#allocation7 + $0x70] sm:$0xff]  ;;  %v179_v20 = vld [vmem:[#allocation7 + $0x68] sm:$0xff] }
  0x2c   :  { %311 = vmatpush3.msra.mxu0 %v71_v3  ;;  %342 = vmatpush3.msra.mxu1 %v181_v18  ;;  %v178_v21 = vld [vmem:[#allocation7 + $0x60] sm:$0xff]  ;;  %v177_v22 = vld [vmem:[#allocation7 + $0x58] sm:$0xff]  ;;  %v176_v33 = vld [vmem:[#allocation7 + $0x50] sm:$0xff] }
  0x2d   :  { %312 = vmatprep.subr.mxu0 %v479_v0  ;;  %343 = vmatprep.subr.mxu1 %v479_v0  ;;  %v271_v25 = vld [vmem:[%s561_s2] ss:$0 sm:$0xff]  ;;  %v175_v34 = vld [vmem:[#allocation7 + $0x48] sm:$0xff]  ;;  %v174_v35 = vld [vmem:[#allocation7 + $0x40] sm:$0xff]  ;;  %s481_s2 = smov [#allocation8]  }
  0x2e   :  { %313 = vmatpush3.msra.mxu0 %v70_v4  ;;  %344 = vmatpush3.msra.mxu1 %v180_v19  ;;  %v173_v36 = vld [vmem:[#allocation7 + $0x38] sm:$0xff]  ;;  %v172_v37 = vld [vmem:[#allocation7 + $0x30] sm:$0xff]  ;;  %v171_v38 = vld [vmem:[#allocation7 + $0x28] sm:$0xff]  ;;  %s261_s5 = sshll.u32 %s481_s2, 4  ;;  %s262_s5 = int_to_ptr.vmem [resolvable:$true] %s261_s5 }
  0x2f   :  { %314 = vmatprep.subr.mxu0 %v479_v0  ;;  %345 = vmatprep.subr.mxu1 %v479_v0  ;;  %v170_v39 = vld [vmem:[#allocation7 + $0x20] sm:$0xff]  ;;  %v169_v40 = vld [vmem:[#allocation7 + $0x18] sm:$0xff]  ;;  %v168_v41 = vld [vmem:[#allocation7 + $0x10] sm:$0xff]  ;;  %s448_s6 = scalar_lea.vmem %s262_s5, 64  ;;  %p453_p2 = scmp.lt.s32.totalorder %s262_s5, %s262_s5 }
  0x30   :  { %315 = vmatpush3.msra.mxu0 %v69_v5  ;;  %346 = vmatpush3.msra.mxu1 %v179_v20  ;;  %v167_v42 = vld [vmem:[#allocation7 + $0x8] sm:$0xff]  ;;  %v166_v43 = vld [vmem:[#allocation7] sm:$0xff]  ;;  %p449_p1 = scmp.ne.s32.totalorder %s262_s5, %s448_s6  ;;  %p454_p3 = scmp.lt.s32.totalorder %s448_s6, %s448_s6 }
  0x31   :  { %316 = vmatprep.subr.mxu0 %v479_v0  ;;  %347 = vmatprep.subr.mxu1 %v479_v0 }
  0x32   :  { %317 = vmatpush3.msra.mxu0 %v68_v6  ;;  %348 = vmatpush3.msra.mxu1 %v178_v21  ;;  %p455_p4 = por %p454_p3, %p453_p2 }
  0x33   :  { %318 = vmatprep.subr.mxu0 %v479_v0  ;;  %349 = vmatprep.subr.mxu1 %v479_v0 }
  0x34   :  { %319 = vmatpush3.msra.mxu0 %v67_v7  ;;  %350 = vmatpush3.msra.mxu1 %v177_v22  ;;  %p456_p5 = pnand %p455_p4, %p449_p1 }
  0x35   :  { %320 = vmatprep.subr.mxu0 %v479_v0  ;;  %351 = vmatprep.subr.mxu1 %v479_v0 }
  0x36   :  { %321 = vmatpush3.msra.mxu0 %v66_v8  ;;  %352 = vmatpush3.msra.mxu1 %v176_v33 }
  0x37   :  { %322 = vmatprep.subr.mxu0 %v479_v0  ;;  %353 = vmatprep.subr.mxu1 %v479_v0 }
  0x38   :  { %323 = vmatpush3.msra.mxu0 %v65_v9  ;;  %354 = vmatpush3.msra.mxu1 %v175_v34 }
  0x39   :  { %324 = vmatprep.subr.mxu0 %v479_v0  ;;  %355 = vmatprep.subr.mxu1 %v479_v0 }
  0x3a   :  { %325 = vmatpush3.msra.mxu0 %v64_v10  ;;  %356 = vmatpush3.msra.mxu1 %v174_v35 }
  0x3b   :  { %326 = vmatprep.subr.mxu0 %v479_v0  ;;  %357 = vmatprep.subr.mxu1 %v479_v0 }
  0x3c   :  { %327 = vmatpush3.msra.mxu0 %v63_v11  ;;  %358 = vmatpush3.msra.mxu1 %v173_v36 }
  0x3d   :  { %328 = vmatprep.subr.mxu0 %v479_v0  ;;  %359 = vmatprep.subr.mxu1 %v479_v0 }
  0x3e   :  { %329 = vmatpush3.msra.mxu0 %v62_v12  ;;  %360 = vmatpush3.msra.mxu1 %v172_v37 }
  0x3f   :  { %330 = vmatprep.subr.mxu0 %v479_v0  ;;  %361 = vmatprep.subr.mxu1 %v479_v0 }
  0x40   :  { %331 = vmatpush3.msra.mxu0 %v61_v13  ;;  %362 = vmatpush3.msra.mxu1 %v171_v38 }
  0x41   :  { %332 = vmatprep.subr.mxu0 %v479_v0  ;;  %363 = vmatprep.subr.mxu1 %v479_v0 }
  0x42   :  { %333 = vmatpush3.msra.mxu0 %v60_v14  ;;  %364 = vmatpush3.msra.mxu1 %v170_v39 }
  0x43   :  { %334 = vmatprep.subr.mxu0 %v479_v0  ;;  %365 = vmatprep.subr.mxu1 %v479_v0 }
  0x44   :  { %335 = vmatpush3.msra.mxu0 %v59_v15  ;;  %366 = vmatpush3.msra.mxu1 %v169_v40 }
  0x45   :  { %336 = vmatprep.subr.mxu0 %v479_v0  ;;  %367 = vmatprep.subr.mxu1 %v479_v0 }
  0x46   :  { %337 = vmatpush3.msra.mxu0 %v58_v16  ;;  %368 = vmatpush3.msra.mxu1 %v168_v41 }
  0x47   :  { %339 = vmatmul.mubr.f32.vlgmr.msra.gmra.mxu0 %v57_v17  ;;  %369 = vmatprep.subr.mxu1 %v479_v0 }
  0x48   :  { %370 = vmatpush3.msra.mxu1 %v167_v42 }
  0x49   :  { %371 = vmatprep.subr.mxu1 %v479_v0 }
  0x4a   :  { %372 = vmatpush3.msra.mxu1 %v166_v43 }
 0x107   :  { %v147_v26 = vpop.f32.mrf.mxu0 }
 0x108   :  { %v148_v27 = vadd.f32 %v271_v25, %v147_v26 }
 0x109   :  { %v340_v28 = vpop.f32.mrf.mxu0 }
 0x10a   :  { %v154_v29 = vsel %vm153_vm1, -inf, %v148_v27  ;;  %v159_v31 = vsel %vm153_vm1, %v148_v27, -inf }
 0x10b   :  { %v156_v30 = vsel %vm155_vm2, %v154_v29, -inf  ;;  %v160_v32 = vsel %vm155_vm2, %v159_v31, -inf }
 0x10c   :  { %157 = vmax.xlane.f32.xlu0 %v156_v30 }
 0x110   :  { %161 = vmax.xlane.f32.xlu0 %v160_v32 }
 0x195   :  { %v158_v44 = vpop.xlane.xlu0 %157 }
 0x199   :  { %v162_v45 = vpop.xlane.xlu0 %161 }
 0x19a   :  { %v163_v46 = vsel %vm153_vm1, %v162_v45, %v158_v44 }
 0x19b   :  { %v164_v47 = vsub.f32 %v148_v27, %v163_v46 }
 0x19d   :  { %384 = vpow2.f32 %v164_v47 }
 0x1aa   :  { %v385_v48 = vpop.eup %384 }
 0x1ab   :  { %374 = vmatmul.mubr.f32.vlgmr.msra.gmra.mxu1 %v385_v48 }
 0x26b   :  { %v248_v49 = vpop.f32.mrf.mxu1 }
 0x26c   :  { %386 = vrcp.f32 %v248_v49 }
 0x26d   :  { %v375_v50 = vpop.f32.mrf.mxu1 }
 0x279   :  { %v387_v51 = vpop.eup %386 }
 0x27a   :  { %v253_v52 = vmul.f32 %v387_v51, %v385_v48 }
 0x27c   :  { %254 = vst [vmem:[#allocation8] sm:$0xf] %v253_v52 }
 0x27d   :  { %459 = shalt.err (!%p456_p5)
}
 0x27e   :  { %264 = dma.vmem_to_hbm [thread:$0]  %s262_s5, 64, %s563_s4, [#allocation4]  }
 0x27f   :  { %472 = dma.done.wait [#allocation4], 64  }
 0x280   :  { %473 = vsyncadd [#allocation4], 4294967232 }
 0x281   :  { %268 = vsyncpa [#allocation3], 1 }
 0x282   :  { %269 = vsyncpa [#allocation6], 1 }
 0x283   :  { %270 = vsyncpa [#allocation4], 1 }

</bundles_post_ra>
